<compile_context>
chip_gen: v5e
topology: v5e:2x2
jax: 0.10.0
libtpu: 0.0.40
codegen_flags: <defaults>
</compile_context>

<pallas_src>
import functools

import jax
import jax.numpy as jnp
from jax.experimental import pallas as pl
from jax.experimental.pallas import tpu as pltpu

_VMEM_LIMIT_BYTES = 48 * 1024 * 1024  # fits v7x physical (64 MiB) with headroom, > v5e default


def _round_up(x, m):
    return ((x + m - 1) // m) * m


def _choose_tiles(n):
    """Pad node count to a 128 multiple and pick MXU-friendly row/K tiles."""
    n_pad = _round_up(max(n, 1), 128)
    tm = 256 if n_pad % 256 == 0 else 128          # row tile (MXU-dim multiple)
    if n_pad % 512 == 0:
        tk = 512                                   # K (A_hat column) tile
    elif n_pad % 256 == 0:
        tk = 256
    else:
        tk = 128
    return n_pad, tm, tk


# ----------------------------------------------------------------------------
# Stage 1: feature transform  XW = X @ W   (tiled over node rows)
# ----------------------------------------------------------------------------
def _xw_kernel(x_ref, w_ref, o_ref):
    o_ref[...] = jnp.dot(
        x_ref[...], w_ref[...], preferred_element_type=jnp.float32
    ).astype(o_ref.dtype)


# ----------------------------------------------------------------------------
# Stage 2: normalized aggregation  out = A_hat @ XW + b
#          grid = (row tiles, K tiles), f32 accumulator in VMEM scratch
# ----------------------------------------------------------------------------
def _agg_kernel(a_ref, xw_ref, b_ref, o_ref, acc_ref):
    k = pl.program_id(1)

    @pl.when(k == 0)
    def _():
        acc_ref[...] = jnp.zeros_like(acc_ref)

    acc_ref[...] += jnp.dot(
        a_ref[...], xw_ref[...], preferred_element_type=jnp.float32
    )

    @pl.when(k == pl.num_programs(1) - 1)
    def _():
        # bias added once, in the finalize branch (not per K tile)
        o_ref[...] = (acc_ref[...] + b_ref[...]).astype(o_ref.dtype)


# ----------------------------------------------------------------------------
# One GCNConv layer: pad -> bf16 cast -> XW kernel -> tiled aggregation kernel
# ----------------------------------------------------------------------------
def gcn_layer(a_pad_bf16, h, w, b, n, n_pad, tm, tk):
    f_in, f_out = w.shape
    f_in_pad = _round_up(f_in, 128)
    f_out_pad = _round_up(f_out, 128)

    h_pad = (
        jnp.zeros((n_pad, f_in_pad), jnp.bfloat16)
        .at[:n, :f_in]
        .set(h.astype(jnp.bfloat16))
    )
    w_pad = (
        jnp.zeros((f_in_pad, f_out_pad), jnp.bfloat16)
        .at[:f_in, :f_out]
        .set(w.astype(jnp.bfloat16))
    )
    b_pad = jnp.zeros((1, f_out_pad), jnp.float32).at[0, :f_out].set(b)

    # --- Stage 1: XW (computed once per layer, row-tiled) -------------------
    xw = pl.pallas_call(
        _xw_kernel,
        out_shape=jax.ShapeDtypeStruct((n_pad, f_out_pad), jnp.bfloat16),
        grid=(n_pad // tm,),
        in_specs=[
            pl.BlockSpec((tm, f_in_pad), lambda i: (i, 0)),
            pl.BlockSpec((f_in_pad, f_out_pad), lambda i: (0, 0)),
        ],
        out_specs=pl.BlockSpec((tm, f_out_pad), lambda i: (i, 0)),
        compiler_params=pltpu.CompilerParams(
            dimension_semantics=("parallel",),
            vmem_limit_bytes=_VMEM_LIMIT_BYTES,
        ),
    )(h_pad, w_pad)

    # --- Stage 2: A_hat @ XW + b (tiled, accumulated in f32) ----------------
    out_pad = pl.pallas_call(
        _agg_kernel,
        out_shape=jax.ShapeDtypeStruct((n_pad, f_out_pad), jnp.float32),
        grid=(n_pad // tm, n_pad // tk),
        in_specs=[
            pl.BlockSpec((tm, tk), lambda i, k: (i, k)),
            pl.BlockSpec((tk, f_out_pad), lambda i, k: (k, 0)),
            pl.BlockSpec((1, f_out_pad), lambda i, k: (0, 0)),
        ],
        out_specs=pl.BlockSpec((tm, f_out_pad), lambda i, k: (i, 0)),
        scratch_shapes=[pltpu.VMEM((tm, f_out_pad), jnp.float32)],
        compiler_params=pltpu.CompilerParams(
            dimension_semantics=("parallel", "arbitrary"),
            vmem_limit_bytes=_VMEM_LIMIT_BYTES,
        ),
    )(a_pad_bf16, xw, b_pad)

    return out_pad[:n, :f_out]


# ----------------------------------------------------------------------------
# Plain-JAX glue
# ----------------------------------------------------------------------------
def build_normalized_adj(edge_index, num_nodes):
    """Dense D^{-1/2}(A+I)D^{-1/2} matching PyG gcn_norm(add_self_loops=True).

    Built ONCE (outside the jit'd forward) since edge_index is static
    preprocessing for repeated forward calls.
    """
    src = edge_index[0]
    dst = edge_index[1]
    a = jnp.zeros((num_nodes, num_nodes), jnp.float32)
    # edge (j -> i): message flows from src j to target i  =>  A[i, j] += 1
    a = a.at[dst, src].add(1.0)
    diag = jnp.arange(num_nodes)
    a = a.at[diag, diag].add(1.0)                  # self loops (no dense eye)
    deg = a.sum(axis=1)                            # in-degree incl. self loop
    dinv_sqrt = jnp.where(deg > 0, jax.lax.rsqrt(deg), 0.0)
    return dinv_sqrt[:, None] * a * dinv_sqrt[None, :]


def init_gcn_params(key, in_dim, num_hidden, num_layers):
    """Deterministic Glorot-uniform weights, zero biases (PyG GCNConv defaults)."""
    dims = [in_dim] + [num_hidden] * num_layers
    params = []
    for l in range(num_layers):
        key, wk = jax.random.split(key)
        f_in, f_out = dims[l], dims[l + 1]
        limit = jnp.sqrt(6.0 / (f_in + f_out))
        w = jax.random.uniform(wk, (f_in, f_out), jnp.float32, -limit, limit)
        b = jnp.zeros((f_out,), jnp.float32)
        params.append((w, b))
    return params


@functools.partial(jax.jit, static_argnames=("return_hidden",))
def gcn_forward(params, x, a_hat, return_hidden=False):
    """GCN.forward (eval mode: dropout is identity; head is Identity)."""
    # TODO(synk): training-mode dropout (F.dropout with training=True) not implemented.
    n = x.shape[0]
    n_pad, tm, tk = _choose_tiles(n)
    # Pad + cast A_hat once per forward; shared (bf16) by every layer.
    a_pad_bf16 = (
        jnp.zeros((n_pad, n_pad), jnp.bfloat16)
        .at[:n, :n]
        .set(a_hat.astype(jnp.bfloat16))
    )
    h = x
    hidden_list = []
    for (w, b) in params:
        h = gcn_layer(a_pad_bf16, h, w, b, n, n_pad, tm, tk)
        hidden_list.append(h)
    if return_hidden:
        return h, hidden_list
    return h


def _reference_forward(params, x, a_hat):
    """Pure-f32 jnp reference for a numerical sanity check."""
    h = x
    for (w, b) in params:
        h = a_hat @ (h @ w) + b[None, :]
    return h


# ----------------------------------------------------------------------------
# Example run
# ----------------------------------------------------------------------------
if __name__ == "__main__":
    key = jax.random.PRNGKey(0)
    k_x, k_e, k_p = jax.random.split(key, 3)

    # Small, module-consistent shapes: 16 nodes, in_dim=8, hidden=32, 2 layers.
    num_nodes = 16
    in_dim = 8
    num_hidden = 32
    num_layers = 2
    num_edges = 24

    x = jax.random.normal(k_x, (num_nodes, in_dim), jnp.float32)
    edge_index = jax.random.randint(k_e, (2, num_edges), 0, num_nodes, jnp.int32)

    params = init_gcn_params(k_p, in_dim, num_hidden, num_layers)

    # A_hat is built once from the static edge_index and reused across calls.
    a_hat = build_normalized_adj(edge_index, num_nodes)

    out = gcn_forward(params, x, a_hat)
    out = jax.block_until_ready(out)

    assert out.shape == (num_nodes, num_hidden)
    assert jnp.all(jnp.isfinite(out))

    # Sanity check against the f32 reference (bf16 MXU operands => loose tolerance).
    ref = _reference_forward(params, x, a_hat)
    assert jnp.allclose(out, ref, rtol=1e-1, atol=1e-1), float(jnp.abs(out - ref).max())

    print("KERNEL_OK")
</pallas_src>

<mosaic_0001>
module attributes {stable_mosaic.version = 11 : i64} {
  func.func @_xw_kernel(%arg0: i32, %arg1: memref<128x128xbf16, #tpu.memory_space<vmem>>, %arg2: memref<128x128xbf16, #tpu.memory_space<vmem>>, %arg3: memref<128x128xbf16, #tpu.memory_space<vmem>>) attributes {dimension_semantics = [#tpu.dimension_semantics<parallel>], iteration_bounds = array<i64: 1>, scalar_prefetch = 0 : i64, scratch_operands = 0 : i64, tpu.core_type = #tpu.core_type<tc>, window_params = [{transform_indices = @transform_0, window_bounds = array<i64: 128, 128>}, {pipeline_mode = #tpu.pipeline_mode<synchronous>, transform_indices = @transform_1, window_bounds = array<i64: 128, 128>}, {transform_indices = @transform_2, window_bounds = array<i64: 128, 128>}]} {
    %c0 = arith.constant 0 : index
    %c0_0 = arith.constant 0 : index
    %0 = vector.load %arg1[%c0, %c0_0] : memref<128x128xbf16, #tpu.memory_space<vmem>>, vector<128x128xbf16>
    %c0_1 = arith.constant 0 : index
    %c0_2 = arith.constant 0 : index
    %1 = vector.load %arg2[%c0_1, %c0_2] : memref<128x128xbf16, #tpu.memory_space<vmem>>, vector<128x128xbf16>
    %cst = arith.constant dense<0.000000e+00> : vector<128x128xf32>
    %2 = tpu.matmul %0, %1, %cst {dimension_numbers = #tpu.dot_dimension_numbers<[1], [0], [0], [1], [0, 0, 1, 1], [], []>} : vector<128x128xbf16>, vector<128x128xbf16>, vector<128x128xf32> -> vector<128x128xf32>
    %3 = arith.truncf %2 : vector<128x128xf32> to vector<128x128xbf16>
    %c0_3 = arith.constant 0 : index
    %c0_4 = arith.constant 0 : index
    %4 = vector.load %arg3[%c0_3, %c0_4] : memref<128x128xbf16, #tpu.memory_space<vmem>>, vector<128x128xbf16>
    tpu.vector_store %arg3[%c0_3, %c0_4], %3 {strides = array<i32>} : memref<128x128xbf16, #tpu.memory_space<vmem>>, vector<128x128xbf16>,
    return
  }
  func.func @transform_0(%arg0: i32) -> (i32, i32) {
    %c0_i32 = arith.constant 0 : i32
    %c0_i32_0 = arith.constant 0 : i32
    return %arg0, %c0_i32 : i32, i32
  }
  func.func @transform_1(%arg0: i32) -> (i32, i32) {
    %c0_i32 = arith.constant 0 : i32
    %c0_i32_0 = arith.constant 0 : i32
    %c0_i32_1 = arith.constant 0 : i32
    return %c0_i32, %c0_i32_0 : i32, i32
  }
  func.func @transform_2(%arg0: i32) -> (i32, i32) {
    %c0_i32 = arith.constant 0 : i32
    %c0_i32_0 = arith.constant 0 : i32
    return %arg0, %c0_i32 : i32, i32
  }
}

module attributes {stable_mosaic.version = 11 : i64} {
  func.func @_agg_kernel(%arg0: i32, %arg1: i32, %arg2: memref<128x128xbf16, #tpu.memory_space<vmem>>, %arg3: memref<128x128xbf16, #tpu.memory_space<vmem>>, %arg4: memref<1x128xf32, #tpu.memory_space<vmem>>, %arg5: memref<128x128xf32, #tpu.memory_space<vmem>>, %arg6: memref<128x128xf32, #tpu.memory_space<vmem>>) attributes {dimension_semantics = [#tpu.dimension_semantics<parallel>, #tpu.dimension_semantics<arbitrary>], iteration_bounds = array<i64: 1, 1>, scalar_prefetch = 0 : i64, scratch_operands = 1 : i64, tpu.core_type = #tpu.core_type<tc>, window_params = [{transform_indices = @transform_0, window_bounds = array<i64: 128, 128>}, {transform_indices = @transform_1, window_bounds = array<i64: 128, 128>}, {pipeline_mode = #tpu.pipeline_mode<synchronous>, transform_indices = @transform_2, window_bounds = array<i64: 1, 128>}, {transform_indices = @transform_3, window_bounds = array<i64: 128, 128>}]} {
    %c0_i32 = arith.constant 0 : i32
    %0 = arith.cmpi eq, %arg1, %c0_i32 : i32
    %1 = arith.extui %0 : i1 to i32
    %c0_i32_0 = arith.constant 0 : i32
    %2 = arith.cmpi ne, %1, %c0_i32_0 : i32
    scf.if %2 {
      %cst_10 = arith.constant 0.000000e+00 : f32
      %12 = vector.broadcast %cst_10 : f32 to vector<128x128xf32>
      %c0_11 = arith.constant 0 : index
      %c0_12 = arith.constant 0 : index
      %13 = vector.load %arg6[%c0_11, %c0_12] : memref<128x128xf32, #tpu.memory_space<vmem>>, vector<128x128xf32>
      tpu.vector_store %arg6[%c0_11, %c0_12], %12 {strides = array<i32>} : memref<128x128xf32, #tpu.memory_space<vmem>>, vector<128x128xf32>,
    } else {
    }
    %c0 = arith.constant 0 : index
    %c0_1 = arith.constant 0 : index
    %3 = vector.load %arg6[%c0, %c0_1] : memref<128x128xf32, #tpu.memory_space<vmem>>, vector<128x128xf32>
    %c0_2 = arith.constant 0 : index
    %c0_3 = arith.constant 0 : index
    %4 = vector.load %arg2[%c0_2, %c0_3] : memref<128x128xbf16, #tpu.memory_space<vmem>>, vector<128x128xbf16>
    %c0_4 = arith.constant 0 : index
    %c0_5 = arith.constant 0 : index
    %5 = vector.load %arg3[%c0_4, %c0_5] : memref<128x128xbf16, #tpu.memory_space<vmem>>, vector<128x128xbf16>
    %cst = arith.constant dense<0.000000e+00> : vector<128x128xf32>
    %6 = tpu.matmul %4, %5, %cst {dimension_numbers = #tpu.dot_dimension_numbers<[1], [0], [0], [1], [0, 0, 1, 1], [], []>} : vector<128x128xbf16>, vector<128x128xbf16>, vector<128x128xf32> -> vector<128x128xf32>
    %7 = arith.addf %3, %6 : vector<128x128xf32>
    %c0_6 = arith.constant 0 : index
    %c0_7 = arith.constant 0 : index
    %8 = vector.load %arg6[%c0_6, %c0_7] : memref<128x128xf32, #tpu.memory_space<vmem>>, vector<128x128xf32>
    tpu.vector_store %arg6[%c0_6, %c0_7], %7 {strides = array<i32>} : memref<128x128xf32, #tpu.memory_space<vmem>>, vector<128x128xf32>,
    %c0_i32_8 = arith.constant 0 : i32
    %9 = arith.cmpi eq, %arg1, %c0_i32_8 : i32
    %10 = arith.extui %9 : i1 to i32
    %c0_i32_9 = arith.constant 0 : i32
    %11 = arith.cmpi ne, %10, %c0_i32_9 : i32
    scf.if %11 {
      %c0_10 = arith.constant 0 : index
      %c0_11 = arith.constant 0 : index
      %12 = vector.load %arg6[%c0_10, %c0_11] : memref<128x128xf32, #tpu.memory_space<vmem>>, vector<128x128xf32>
      %c0_12 = arith.constant 0 : index
      %c0_13 = arith.constant 0 : index
      %13 = vector.load %arg4[%c0_12, %c0_13] : memref<1x128xf32, #tpu.memory_space<vmem>>, vector<1x128xf32>
      %14 = vector.broadcast %13 : vector<1x128xf32> to vector<128x128xf32>
      %15 = arith.addf %12, %14 : vector<128x128xf32>
      %c0_14 = arith.constant 0 : index
      %c0_15 = arith.constant 0 : index
      %16 = vector.load %arg5[%c0_14, %c0_15] : memref<128x128xf32, #tpu.memory_space<vmem>>, vector<128x128xf32>
      tpu.vector_store %arg5[%c0_14, %c0_15], %15 {strides = array<i32>} : memref<128x128xf32, #tpu.memory_space<vmem>>, vector<128x128xf32>,
    } else {
    }
    return
  }
  func.func @transform_0(%arg0: i32, %arg1: i32) -> (i32, i32) {
    %c0_i32 = arith.constant 0 : i32
    return %arg0, %arg1 : i32, i32
  }
  func.func @transform_1(%arg0: i32, %arg1: i32) -> (i32, i32) {
    %c0_i32 = arith.constant 0 : i32
    %c0_i32_0 = arith.constant 0 : i32
    return %arg1, %c0_i32 : i32, i32
  }
  func.func @transform_2(%arg0: i32, %arg1: i32) -> (i32, i32) {
    %c0_i32 = arith.constant 0 : i32
    %c0_i32_0 = arith.constant 0 : i32
    %c0_i32_1 = arith.constant 0 : i32
    return %c0_i32, %c0_i32_0 : i32, i32
  }
  func.func @transform_3(%arg0: i32, %arg1: i32) -> (i32, i32) {
    %c0_i32 = arith.constant 0 : i32
    %c0_i32_0 = arith.constant 0 : i32
    return %arg0, %c0_i32 : i32, i32
  }
}

</mosaic_0001>

<bundles_post_ra>
// kernel: gcn_forward.5
= control target key start
LH: loop header
LB: loop body
LE: loop exit
PB: predicated region body
PF: predicated region fallthrough
CT: control target
= control target key end

     0   :  { %s542_s1 = inlined_call_operand.vmem [shape: bf16[128,128], index: 1, kind: input, shape index: {}]   ;;  %s543_s2 = inlined_call_operand.vmem [shape: f32[1,128], index: 2, kind: input, shape index: {}]   ;;  %s544_s0 = inlined_call_operand.vmem [shape: bf16[128,128], index: 0, kind: input, shape index: {}]   ;;  %s545_s3 = inlined_call_operand.vmem [shape: f32[128,128], index: 3, kind: output, shape index: {}]  }
   0x1   :  { %v397_v0 = vld [vmem:[%s542_s1 + $0x38] sm:$0xff]  ;;  %v396_v1 = vld [vmem:[%s542_s1 + $0x30] sm:$0xff]  ;;  %v395_v2 = vld [vmem:[%s542_s1 + $0x28] sm:$0xff] }
   0x2   :  { %178 = vmatpush.bf16.msra.mxu0 %v397_v0  ;;  %398 = vmatpush.bf16.msra.mxu1 %v397_v0  ;;  %v394_v3 = vld [vmem:[%s542_s1 + $0x20] sm:$0xff]  ;;  %v393_v4 = vld [vmem:[%s542_s1 + $0x18] sm:$0xff]  ;;  %v392_v5 = vld [vmem:[%s542_s1 + $0x10] sm:$0xff] }
   0x3   :  { %399 = vmatpush.bf16.msra.mxu2 %v397_v0  ;;  %400 = vmatpush.bf16.msra.mxu3 %v397_v0  ;;  %v391_v6 = vld [vmem:[%s542_s1 + $0x8] sm:$0xff]  ;;  %v390_v7 = vld [vmem:[%s542_s1] sm:$0xff]  ;;  %v384_v9 = vld [vmem:[%s544_s0 + $0x10] sm:$0xff] }
   0x4   :  { %v382_v8 = vld [vmem:[%s544_s0] sm:$0xff]  ;;  %v388_v11 = vld [vmem:[%s544_s0 + $0x30] sm:$0xff]  ;;  %v383_v12 = vld [vmem:[%s544_s0 + $0x8] sm:$0xff] }
   0x5   :  { %v386_v10 = vld [vmem:[%s544_s0 + $0x20] sm:$0xff]  ;;  %v385_v13 = vld [vmem:[%s544_s0 + $0x18] sm:$0xff]  ;;  %v387_v14 = vld [vmem:[%s544_s0 + $0x28] sm:$0xff] }
   0x6   :  { %179 = vmatpush.bf16.msra.mxu0 %v396_v1  ;;  %401 = vmatpush.bf16.msra.mxu1 %v396_v1  ;;  %v389_v15 = vld [vmem:[%s544_s0 + $0x38] sm:$0xff]  ;;  %v422_v16 = vld [vmem:[%s543_s2] ss:$0 sm:$0xff] }
   0x7   :  { %402 = vmatpush.bf16.msra.mxu2 %v396_v1  ;;  %403 = vmatpush.bf16.msra.mxu3 %v396_v1 }
   0xa   :  { %180 = vmatpush.bf16.msra.mxu0 %v395_v2  ;;  %404 = vmatpush.bf16.msra.mxu1 %v395_v2 }
   0xb   :  { %405 = vmatpush.bf16.msra.mxu2 %v395_v2  ;;  %406 = vmatpush.bf16.msra.mxu3 %v395_v2 }
   0xe   :  { %181 = vmatpush.bf16.msra.mxu0 %v394_v3  ;;  %407 = vmatpush.bf16.msra.mxu1 %v394_v3 }
   0xf   :  { %408 = vmatpush.bf16.msra.mxu2 %v394_v3  ;;  %409 = vmatpush.bf16.msra.mxu3 %v394_v3 }
  0x12   :  { %182 = vmatpush.bf16.msra.mxu0 %v393_v4  ;;  %410 = vmatpush.bf16.msra.mxu1 %v393_v4 }
  0x13   :  { %411 = vmatpush.bf16.msra.mxu2 %v393_v4  ;;  %412 = vmatpush.bf16.msra.mxu3 %v393_v4 }
  0x16   :  { %183 = vmatpush.bf16.msra.mxu0 %v392_v5  ;;  %413 = vmatpush.bf16.msra.mxu1 %v392_v5 }
  0x17   :  { %414 = vmatpush.bf16.msra.mxu2 %v392_v5  ;;  %415 = vmatpush.bf16.msra.mxu3 %v392_v5 }
  0x1a   :  { %184 = vmatpush.bf16.msra.mxu0 %v391_v6  ;;  %416 = vmatpush.bf16.msra.mxu1 %v391_v6 }
  0x1b   :  { %417 = vmatpush.bf16.msra.mxu2 %v391_v6  ;;  %418 = vmatpush.bf16.msra.mxu3 %v391_v6 }
  0x1e   :  { %185 = vmatpush.bf16.msra.mxu0 %v390_v7  ;;  %419 = vmatpush.bf16.msra.mxu1 %v390_v7 }
  0x1f   :  { %420 = vmatpush.bf16.msra.mxu2 %v390_v7  ;;  %421 = vmatpush.bf16.msra.mxu3 %v390_v7 }
  0x21   :  { %186 = vmatmul.bf16.vlgmr.msra.gmra.mxu0 %v382_v8  ;;  %196 = vmatmul.bf16.vlgmr.msra.gmra.mxu1 %v384_v9 }
  0x22   :  { %206 = vmatmul.bf16.vlgmr.msra.gmra.mxu2 %v386_v10  ;;  %216 = vmatmul.bf16.vlgmr.msra.gmra.mxu3 %v388_v11 }
  0x31   :  { %191 = vmatmul.bf16.gmra.mxu0 %v383_v12  ;;  %201 = vmatmul.bf16.gmra.mxu1 %v385_v13 }
  0x32   :  { %211 = vmatmul.bf16.gmra.mxu2 %v387_v14  ;;  %221 = vmatmul.bf16.gmra.mxu3 %v389_v15 }
  0x9e   :  { %v187_v17 = vpop.f32.mrf.mxu0  ;;  %v197_v18 = vpop.f32.mrf.mxu1 }
  0x9f   :  { %v282_v19 = vadd.f32 %v422_v16, %v187_v17  ;;  %v286_v20 = vadd.f32 %v422_v16, %v197_v18 }
  0xa1   :  { %298 = vst [vmem:[%s545_s3] sm:$0xff] %v282_v19 }
  0xa2   :  { %302 = vst [vmem:[%s545_s3 + $0x20] sm:$0xff] %v286_v20 }
  0xa5   :  { %v207_v21 = vpop.f32.mrf.mxu2  ;;  %v217_v22 = vpop.f32.mrf.mxu3 }
  0xa6   :  { %v290_v23 = vadd.f32 %v422_v16, %v207_v21  ;;  %v294_v24 = vadd.f32 %v422_v16, %v217_v22  ;;  %v189_v25 = vpop.f32.mrf.mxu0  ;;  %v199_v26 = vpop.f32.mrf.mxu1 }
  0xa7   :  { %v283_v27 = vadd.f32 %v422_v16, %v189_v25  ;;  %v287_v28 = vadd.f32 %v422_v16, %v199_v26 }
  0xa8   :  { %306 = vst [vmem:[%s545_s3 + $0x40] sm:$0xff] %v290_v23 }
  0xa9   :  { %310 = vst [vmem:[%s545_s3 + $0x60] sm:$0xff] %v294_v24 }
  0xaa   :  { %299 = vst [vmem:[%s545_s3 + $0x8] sm:$0xff] %v283_v27 }
  0xab   :  { %303 = vst [vmem:[%s545_s3 + $0x28] sm:$0xff] %v287_v28 }
  0xad   :  { %v209_v29 = vpop.f32.mrf.mxu2  ;;  %v219_v30 = vpop.f32.mrf.mxu3 }
  0xae   :  { %v291_v31 = vadd.f32 %v422_v16, %v209_v29  ;;  %v295_v32 = vadd.f32 %v422_v16, %v219_v30  ;;  %v192_v33 = vpop.f32.mrf.mxu0  ;;  %v202_v34 = vpop.f32.mrf.mxu1 }
  0xaf   :  { %v284_v35 = vadd.f32 %v422_v16, %v192_v33  ;;  %v288_v36 = vadd.f32 %v422_v16, %v202_v34 }
  0xb0   :  { %307 = vst [vmem:[%s545_s3 + $0x48] sm:$0xff] %v291_v31 }
  0xb1   :  { %311 = vst [vmem:[%s545_s3 + $0x68] sm:$0xff] %v295_v32 }
  0xb2   :  { %300 = vst [vmem:[%s545_s3 + $0x10] sm:$0xff] %v284_v35 }
  0xb3   :  { %304 = vst [vmem:[%s545_s3 + $0x30] sm:$0xff] %v288_v36 }
  0xb5   :  { %v212_v37 = vpop.f32.mrf.mxu2  ;;  %v222_v38 = vpop.f32.mrf.mxu3 }
  0xb6   :  { %v292_v39 = vadd.f32 %v422_v16, %v212_v37  ;;  %v296_v40 = vadd.f32 %v422_v16, %v222_v38  ;;  %v194_v41 = vpop.f32.mrf.mxu0  ;;  %v204_v42 = vpop.f32.mrf.mxu1 }
  0xb7   :  { %v285_v43 = vadd.f32 %v422_v16, %v194_v41  ;;  %v289_v44 = vadd.f32 %v422_v16, %v204_v42 }
  0xb8   :  { %308 = vst [vmem:[%s545_s3 + $0x50] sm:$0xff] %v292_v39 }
  0xb9   :  { %312 = vst [vmem:[%s545_s3 + $0x70] sm:$0xff] %v296_v40 }
  0xba   :  { %301 = vst [vmem:[%s545_s3 + $0x18] sm:$0xff] %v285_v43 }
  0xbb   :  { %305 = vst [vmem:[%s545_s3 + $0x38] sm:$0xff] %v289_v44 }
  0xbd   :  { %v214_v45 = vpop.f32.mrf.mxu2  ;;  %v224_v46 = vpop.f32.mrf.mxu3 }
  0xbe   :  { %v293_v47 = vadd.f32 %v422_v16, %v214_v45  ;;  %v297_v48 = vadd.f32 %v422_v16, %v224_v46 }
  0xc0   :  { %309 = vst [vmem:[%s545_s3 + $0x58] sm:$0xff] %v293_v47 }
  0xc1   :  { %313 = vst [vmem:[%s545_s3 + $0x78] sm:$0xff] %v297_v48 }

// kernel: gcn_forward.4
= control target key start
LH: loop header
LB: loop body
LE: loop exit
PB: predicated region body
PF: predicated region fallthrough
CT: control target
= control target key end

     0   :  { %s462_s1 = inlined_call_operand.vmem [shape: bf16[128,128], index: 1, kind: input, shape index: {}]   ;;  %s463_s0 = inlined_call_operand.vmem [shape: bf16[128,128], index: 0, kind: input, shape index: {}]   ;;  %s464_s2 = inlined_call_operand.vmem [shape: bf16[128,128], index: 2, kind: output, shape index: {}]  }
   0x1   :  { %v303_v0 = vld [vmem:[%s462_s1 + $0x38] sm:$0xff]  ;;  %v302_v1 = vld [vmem:[%s462_s1 + $0x30] sm:$0xff]  ;;  %v301_v2 = vld [vmem:[%s462_s1 + $0x28] sm:$0xff] }
   0x2   :  { %139 = vmatpush.bf16.msra.mxu0 %v303_v0  ;;  %351 = vmatpush.bf16.msra.mxu1 %v303_v0  ;;  %v300_v3 = vld [vmem:[%s462_s1 + $0x20] sm:$0xff]  ;;  %v299_v4 = vld [vmem:[%s462_s1 + $0x18] sm:$0xff]  ;;  %v298_v5 = vld [vmem:[%s462_s1 + $0x10] sm:$0xff] }
   0x3   :  { %352 = vmatpush.bf16.msra.mxu2 %v303_v0  ;;  %353 = vmatpush.bf16.msra.mxu3 %v303_v0  ;;  %v297_v6 = vld [vmem:[%s462_s1 + $0x8] sm:$0xff]  ;;  %v296_v7 = vld [vmem:[%s462_s1] sm:$0xff]  ;;  %v290_v9 = vld [vmem:[%s463_s0 + $0x10] sm:$0xff] }
   0x4   :  { %v288_v8 = vld [vmem:[%s463_s0] sm:$0xff]  ;;  %v294_v11 = vld [vmem:[%s463_s0 + $0x30] sm:$0xff]  ;;  %v289_v12 = vld [vmem:[%s463_s0 + $0x8] sm:$0xff] }
   0x5   :  { %v292_v10 = vld [vmem:[%s463_s0 + $0x20] sm:$0xff]  ;;  %v291_v13 = vld [vmem:[%s463_s0 + $0x18] sm:$0xff]  ;;  %v293_v14 = vld [vmem:[%s463_s0 + $0x28] sm:$0xff] }
   0x6   :  { %140 = vmatpush.bf16.msra.mxu0 %v302_v1  ;;  %354 = vmatpush.bf16.msra.mxu1 %v302_v1  ;;  %v295_v15 = vld [vmem:[%s463_s0 + $0x38] sm:$0xff] }
   0x7   :  { %355 = vmatpush.bf16.msra.mxu2 %v302_v1  ;;  %356 = vmatpush.bf16.msra.mxu3 %v302_v1 }
   0xa   :  { %141 = vmatpush.bf16.msra.mxu0 %v301_v2  ;;  %357 = vmatpush.bf16.msra.mxu1 %v301_v2 }
   0xb   :  { %358 = vmatpush.bf16.msra.mxu2 %v301_v2  ;;  %359 = vmatpush.bf16.msra.mxu3 %v301_v2 }
   0xe   :  { %142 = vmatpush.bf16.msra.mxu0 %v300_v3  ;;  %360 = vmatpush.bf16.msra.mxu1 %v300_v3 }
   0xf   :  { %361 = vmatpush.bf16.msra.mxu2 %v300_v3  ;;  %362 = vmatpush.bf16.msra.mxu3 %v300_v3 }
  0x12   :  { %143 = vmatpush.bf16.msra.mxu0 %v299_v4  ;;  %363 = vmatpush.bf16.msra.mxu1 %v299_v4 }
  0x13   :  { %364 = vmatpush.bf16.msra.mxu2 %v299_v4  ;;  %365 = vmatpush.bf16.msra.mxu3 %v299_v4 }
  0x16   :  { %144 = vmatpush.bf16.msra.mxu0 %v298_v5  ;;  %366 = vmatpush.bf16.msra.mxu1 %v298_v5 }
  0x17   :  { %367 = vmatpush.bf16.msra.mxu2 %v298_v5  ;;  %368 = vmatpush.bf16.msra.mxu3 %v298_v5 }
  0x1a   :  { %145 = vmatpush.bf16.msra.mxu0 %v297_v6  ;;  %369 = vmatpush.bf16.msra.mxu1 %v297_v6 }
  0x1b   :  { %370 = vmatpush.bf16.msra.mxu2 %v297_v6  ;;  %371 = vmatpush.bf16.msra.mxu3 %v297_v6 }
  0x1e   :  { %146 = vmatpush.bf16.msra.mxu0 %v296_v7  ;;  %372 = vmatpush.bf16.msra.mxu1 %v296_v7 }
  0x1f   :  { %373 = vmatpush.bf16.msra.mxu2 %v296_v7  ;;  %374 = vmatpush.bf16.msra.mxu3 %v296_v7 }
  0x21   :  { %147 = vmatmul.bf16.vlgmr.msra.gmra.mxu0 %v288_v8  ;;  %157 = vmatmul.bf16.vlgmr.msra.gmra.mxu1 %v290_v9 }
  0x22   :  { %167 = vmatmul.bf16.vlgmr.msra.gmra.mxu2 %v292_v10  ;;  %177 = vmatmul.bf16.vlgmr.msra.gmra.mxu3 %v294_v11 }
  0x31   :  { %152 = vmatmul.bf16.gmra.mxu0 %v289_v12  ;;  %162 = vmatmul.bf16.gmra.mxu1 %v291_v13 }
  0x32   :  { %172 = vmatmul.bf16.gmra.mxu2 %v293_v14  ;;  %182 = vmatmul.bf16.gmra.mxu3 %v295_v15 }
  0x9e   :  { %v148_v16 = vpop.f32.mrf.mxu0  ;;  %v158_v17 = vpop.f32.mrf.mxu1 }
  0xa5   :  { %v168_v18 = vpop.f32.mrf.mxu2  ;;  %v178_v19 = vpop.f32.mrf.mxu3 }
  0xa6   :  { %v150_v20 = vpop.f32.mrf.mxu0  ;;  %v160_v21 = vpop.f32.mrf.mxu1 }
  0xa7   :  { %v307_v22 = vpack.c.bf16 %v150_v20, %v148_v16  ;;  %v317_v23 = vpack.c.bf16 %v160_v21, %v158_v17 }
  0xa9   :  { %308 = vst [vmem:[%s464_s2] sm:$0xff] %v307_v22  }
  0xaa   :  { %345 = vst [vmem:[%s464_s2 + $0x10] sm:$0xff] %v317_v23  }
  0xad   :  { %v170_v24 = vpop.f32.mrf.mxu2  ;;  %v180_v25 = vpop.f32.mrf.mxu3 }
  0xae   :  { %v327_v26 = vpack.c.bf16 %v170_v24, %v168_v18  ;;  %v337_v27 = vpack.c.bf16 %v180_v25, %v178_v19  ;;  %v153_v28 = vpop.f32.mrf.mxu0  ;;  %v163_v29 = vpop.f32.mrf.mxu1 }
  0xb0   :  { %347 = vst [vmem:[%s464_s2 + $0x20] sm:$0xff] %v327_v26  }
  0xb1   :  { %349 = vst [vmem:[%s464_s2 + $0x30] sm:$0xff] %v337_v27  }
  0xb5   :  { %v173_v30 = vpop.f32.mrf.mxu2  ;;  %v183_v31 = vpop.f32.mrf.mxu3 }
  0xb6   :  { %v155_v32 = vpop.f32.mrf.mxu0  ;;  %v165_v33 = vpop.f32.mrf.mxu1 }
  0xb7   :  { %v312_v34 = vpack.c.bf16 %v155_v32, %v153_v28  ;;  %v322_v35 = vpack.c.bf16 %v165_v33, %v163_v29 }
  0xb9   :  { %344 = vst [vmem:[%s464_s2 + $0x8] sm:$0xff] %v312_v34  }
  0xba   :  { %346 = vst [vmem:[%s464_s2 + $0x18] sm:$0xff] %v322_v35  }
  0xbd   :  { %v175_v36 = vpop.f32.mrf.mxu2  ;;  %v185_v37 = vpop.f32.mrf.mxu3 }
  0xbe   :  { %v332_v38 = vpack.c.bf16 %v175_v36, %v173_v30  ;;  %v342_v39 = vpack.c.bf16 %v185_v37, %v183_v31 }
  0xc0   :  { %348 = vst [vmem:[%s464_s2 + $0x28] sm:$0xff] %v332_v38  }
  0xc1   :  { %350 = vst [vmem:[%s464_s2 + $0x38] sm:$0xff] %v342_v39  }

</bundles_post_ra>
